<compile_context>
chip_gen: v7x
topology: tpu7x:2x2x1
jax: 0.10.0
libtpu: 0.0.40
codegen_flags: <defaults>
</compile_context>

<pallas_src>
import jax
import jax.numpy as jnp
from jax.experimental import pallas as pl
from jax.experimental.pallas import tpu as pltpu

IN_F, H1, H2, OUT_F = 4, 24, 24, 2
K1_PAD = 8     # padded input-feature dim (sublane-aligned K for layer 1)
LANES = 128    # lane width for all hidden/output feature dims


def actor_kernel(x_ref, w1_ref, w2_ref, w3_ref, b_ref, o_ref):
    # x_ref  : (B, 8)     f32  -- cols 4..7 zero
    # w1_ref : (8, 128)   f32  -- rows >=4 and cols >=24 zero
    # w2_ref : (128, 128) f32  -- rows >=24 and cols >=24 zero
    # w3_ref : (128, 128) f32  -- rows >=24 and cols >=2  zero
    # b_ref  : (8, 128)   f32  -- row 0 = b1, row 1 = b2, row 2 = b3 (zero-padded)
    x = x_ref[...]

    # Linear(4, 24) + ReLU
    h1 = jnp.dot(x, w1_ref[...], preferred_element_type=jnp.float32) + b_ref[0:1, :]
    h1 = jnp.maximum(h1, 0.0)

    # Linear(24, 24) + ReLU
    h2 = jnp.dot(h1, w2_ref[...], preferred_element_type=jnp.float32) + b_ref[1:2, :]
    h2 = jnp.maximum(h2, 0.0)

    # Linear(24, 2)
    logits = jnp.dot(h2, w3_ref[...], preferred_element_type=jnp.float32) + b_ref[2:3, :]

    # Softmax over dim=0 (batch axis), matching nn.Softmax(dim=0).
    m = jnp.max(logits, axis=0, keepdims=True)
    e = jnp.exp(logits - m)
    o_ref[...] = e / jnp.sum(e, axis=0, keepdims=True)


def _pad2d(a, rows, cols):
    out = jnp.zeros((rows, cols), dtype=jnp.float32)
    return out.at[: a.shape[0], : a.shape[1]].set(a)


def prepare_params(params):
    """One-time padding of weights/biases into kernel-ready, lane-dense buffers."""
    w1, b1, w2, b2, w3, b3 = params
    w1_p = _pad2d(w1, K1_PAD, LANES)
    w2_p = _pad2d(w2, LANES, LANES)
    w3_p = _pad2d(w3, LANES, LANES)
    b_p = jnp.zeros((8, LANES), jnp.float32)
    b_p = b_p.at[0, : b1.shape[0]].set(b1)
    b_p = b_p.at[1, : b2.shape[0]].set(b2)
    b_p = b_p.at[2, : b3.shape[0]].set(b3)
    return (w1_p, w2_p, w3_p, b_p)


@jax.jit
def actor_forward(x, padded_params):
    """x: (B, 4) float32 -> (B, 2) float32 (softmax over dim 0)."""
    w1_p, w2_p, w3_p, b_p = padded_params
    B = x.shape[0]

    # Only the tiny activation is padded per call; param padding was hoisted to init.
    x_p = jnp.zeros((B, K1_PAD), jnp.float32).at[:, :IN_F].set(x)

    vmem = pl.BlockSpec(memory_space=pltpu.MemorySpace.VMEM)
    out = pl.pallas_call(
        actor_kernel,
        out_shape=jax.ShapeDtypeStruct((B, LANES), jnp.float32),
        in_specs=[vmem] * 5,
        out_specs=vmem,
    )(x_p, w1_p, w2_p, w3_p, b_p)

    return out[:, :OUT_F]


def init_params(key):
    """PyTorch-style Linear init: U(-1/sqrt(fan_in), 1/sqrt(fan_in)), deterministic."""
    ks = jax.random.split(key, 6)

    def lin(kw, kb, fan_in, fan_out):
        bound = 1.0 / jnp.sqrt(fan_in)
        w = jax.random.uniform(kw, (fan_in, fan_out), jnp.float32, -bound, bound)
        b = jax.random.uniform(kb, (fan_out,), jnp.float32, -bound, bound)
        return w, b

    w1, b1 = lin(ks[0], ks[1], IN_F, H1)
    w2, b2 = lin(ks[2], ks[3], H1, H2)
    w3, b3 = lin(ks[4], ks[5], H2, OUT_F)
    return (w1, b1, w2, b2, w3, b3)


def actor_forward_ref(x, params):
    w1, b1, w2, b2, w3, b3 = params
    h1 = jnp.maximum(x @ w1 + b1, 0.0)
    h2 = jnp.maximum(h1 @ w2 + b2, 0.0)
    logits = h2 @ w3 + b3
    return jax.nn.softmax(logits, axis=0)


if __name__ == "__main__":
    key = jax.random.PRNGKey(0)
    k_param, k_x = jax.random.split(key)

    params = init_params(k_param)
    padded_params = jax.tree_util.tree_map(jax.block_until_ready, prepare_params(params))

    B = 8
    x = jax.random.normal(k_x, (B, IN_F), jnp.float32)  # e.g. CartPole states, batch=8

    y = actor_forward(x, padded_params)
    y = jax.block_until_ready(y)

    y_ref = actor_forward_ref(x, params)
    assert y.shape == (B, OUT_F)
    assert jnp.allclose(y, y_ref, atol=1e-5, rtol=1e-5), "mismatch vs pure-JAX reference"

    print("KERNEL_OK")
</pallas_src>

<mosaic_0001>
module attributes {stable_mosaic.version = 11 : i64} {
  func.func @actor_kernel(%arg0: memref<8x8xf32, #tpu.memory_space<vmem>>, %arg1: memref<8x128xf32, #tpu.memory_space<vmem>>, %arg2: memref<128x128xf32, #tpu.memory_space<vmem>>, %arg3: memref<128x128xf32, #tpu.memory_space<vmem>>, %arg4: memref<8x128xf32, #tpu.memory_space<vmem>>, %arg5: memref<8x128xf32, #tpu.memory_space<vmem>>) attributes {dimension_semantics = [], scalar_prefetch = 0 : i64, scratch_operands = 0 : i64, tpu.core_type = #tpu.core_type<tc>} {
    %c0 = arith.constant 0 : index
    %c0_0 = arith.constant 0 : index
    %0 = vector.load %arg0[%c0, %c0_0] : memref<8x8xf32, #tpu.memory_space<vmem>>, vector<8x8xf32>
    %c0_1 = arith.constant 0 : index
    %c0_2 = arith.constant 0 : index
    %1 = vector.load %arg1[%c0_1, %c0_2] : memref<8x128xf32, #tpu.memory_space<vmem>>, vector<8x128xf32>
    %cst = arith.constant dense<0.000000e+00> : vector<8x128xf32>
    %2 = tpu.matmul %0, %1, %cst {dimension_numbers = #tpu.dot_dimension_numbers<[1], [0], [0], [1], [0, 0, 1, 1], [], []>} : vector<8x8xf32>, vector<8x128xf32>, vector<8x128xf32> -> vector<8x128xf32>
    %c0_3 = arith.constant 0 : index
    %c0_4 = arith.constant 0 : index
    %3 = vector.load %arg4[%c0_3, %c0_4] : memref<8x128xf32, #tpu.memory_space<vmem>>, vector<1x128xf32>
    %4 = vector.broadcast %3 : vector<1x128xf32> to vector<8x128xf32>
    %5 = arith.addf %2, %4 : vector<8x128xf32>
    %cst_5 = arith.constant 0.000000e+00 : f32
    %6 = vector.broadcast %cst_5 : f32 to vector<8x128xf32>
    %7 = arith.maximumf %5, %6 : vector<8x128xf32>
    %c0_6 = arith.constant 0 : index
    %c0_7 = arith.constant 0 : index
    %8 = vector.load %arg2[%c0_6, %c0_7] : memref<128x128xf32, #tpu.memory_space<vmem>>, vector<128x128xf32>
    %cst_8 = arith.constant dense<0.000000e+00> : vector<8x128xf32>
    %9 = tpu.matmul %7, %8, %cst_8 {dimension_numbers = #tpu.dot_dimension_numbers<[1], [0], [0], [1], [0, 0, 1, 1], [], []>} : vector<8x128xf32>, vector<128x128xf32>, vector<8x128xf32> -> vector<8x128xf32>
    %c1 = arith.constant 1 : index
    %c0_9 = arith.constant 0 : index
    %10 = vector.load %arg4[%c1, %c0_9] : memref<8x128xf32, #tpu.memory_space<vmem>>, vector<1x128xf32>
    %11 = vector.broadcast %10 : vector<1x128xf32> to vector<8x128xf32>
    %12 = arith.addf %9, %11 : vector<8x128xf32>
    %cst_10 = arith.constant 0.000000e+00 : f32
    %13 = vector.broadcast %cst_10 : f32 to vector<8x128xf32>
    %14 = arith.maximumf %12, %13 : vector<8x128xf32>
    %c0_11 = arith.constant 0 : index
    %c0_12 = arith.constant 0 : index
    %15 = vector.load %arg3[%c0_11, %c0_12] : memref<128x128xf32, #tpu.memory_space<vmem>>, vector<128x128xf32>
    %cst_13 = arith.constant dense<0.000000e+00> : vector<8x128xf32>
    %16 = tpu.matmul %14, %15, %cst_13 {dimension_numbers = #tpu.dot_dimension_numbers<[1], [0], [0], [1], [0, 0, 1, 1], [], []>} : vector<8x128xf32>, vector<128x128xf32>, vector<8x128xf32> -> vector<8x128xf32>
    %c2 = arith.constant 2 : index
    %c0_14 = arith.constant 0 : index
    %17 = vector.load %arg4[%c2, %c0_14] : memref<8x128xf32, #tpu.memory_space<vmem>>, vector<1x128xf32>
    %18 = vector.broadcast %17 : vector<1x128xf32> to vector<8x128xf32>
    %19 = arith.addf %16, %18 : vector<8x128xf32>
    %cst_15 = arith.constant dense<0xFF800000> : vector<128xf32>
    %20 = vector.multi_reduction <maximumf>, %19, %cst_15 [0] : vector<8x128xf32> to vector<128xf32>
    %21 = vector.shape_cast %20 : vector<128xf32> to vector<1x128xf32>
    %22 = vector.broadcast %21 : vector<1x128xf32> to vector<8x128xf32>
    %23 = arith.subf %19, %22 : vector<8x128xf32>
    %24 = math.exp %23 : vector<8x128xf32>
    %cst_16 = arith.constant dense<0.000000e+00> : vector<128xf32>
    %25 = vector.multi_reduction <add>, %24, %cst_16 [0] : vector<8x128xf32> to vector<128xf32>
    %26 = vector.shape_cast %25 : vector<128xf32> to vector<1x128xf32>
    %27 = vector.broadcast %26 : vector<1x128xf32> to vector<8x128xf32>
    %28 = arith.divf %24, %27 : vector<8x128xf32>
    %c0_17 = arith.constant 0 : index
    %c0_18 = arith.constant 0 : index
    %29 = vector.load %arg5[%c0_17, %c0_18] : memref<8x128xf32, #tpu.memory_space<vmem>>, vector<8x128xf32>
    tpu.vector_store %arg5[%c0_17, %c0_18], %28 {strides = array<i32>} : memref<8x128xf32, #tpu.memory_space<vmem>>, vector<8x128xf32>,
    return
  }
}

</mosaic_0001>

<bundles_post_ra>
// kernel: actor_forward.1
= control target key start
LH: loop header
LB: loop body
LE: loop exit
PB: predicated region body
PF: predicated region fallthrough
CT: control target
= control target key end

     0   :  { %10 = vsyncpa [#allocation3], 0  ;;  %s657_s0 = inlined_call_operand.vmem [shape: f32[8,8], index: 0, kind: input, shape index: {}]   ;;  %s658_s1 = inlined_call_operand.vmem [shape: f32[8,128], index: 1, kind: input, shape index: {}]   ;;  %s659_s2 = inlined_call_operand.hbm [shape: f32[128,128], index: 2, kind: input, shape index: {}]   ;;  %s660_s3 = inlined_call_operand.hbm [shape: f32[128,128], index: 3, kind: input, shape index: {}]   ;;  %s661_s4 = inlined_call_operand.vmem [shape: f32[8,128], index: 4, kind: input, shape index: {}]   ;;  %s662_s5 = inlined_call_operand.vmem [shape: f32[8,128], index: 5, kind: output, shape index: {}]  }
   0x1   :  { %11 = vsyncpa [#allocation5], 0  ;;  %s559_s18 = smov [#allocation2]   ;;  %s511_s22 = scalar_lea.hbm %s659_s2, 2048 }
   0x2   :  { %s21_s19 = sshll.u32 %s559_s18, 4  ;;  %p512_p0 = scmp.ne.s32.totalorder %s659_s2, %s511_s22  ;;  %s22_s19 = int_to_ptr.vmem [resolvable:$true] %s21_s19 }
   0x3   :  { %p515_p1 = scmp.lt.u32.totalorder %s511_s22, %s659_s2 }
   0x5   :  { %p517_p2 = pnand %p515_p1, %p512_p0 }
   0x7   :  { %520 = shalt.err (!%p517_p2)
}
   0x8   :  { %s521_s27 = scalar_lea.vmem %s22_s19, 2048  ;;  %p526_p4 = scmp.lt.s32.totalorder %s22_s19, %s22_s19 }
   0x9   :  { %p522_p3 = scmp.ne.s32.totalorder %s22_s19, %s521_s27  ;;  %p527_p5 = scmp.lt.s32.totalorder %s521_s27, %s521_s27 }
   0xb   :  { %p528_p6 = por %p527_p5, %p526_p4 }
   0xd   :  { %p529_p7 = pnand %p528_p6, %p522_p3 }
   0xf   :  { %532 = shalt.err (!%p529_p7)
}
  0x10   :  { %s560_s28 = smov 128   ;;  %s561_s29 = smov 8  }
  0x11   :  { %27 = dma.hbm_to_vmem [thread:$0]  %s659_s2, 2048, %s22_s19, [#allocation3], %s560_s28, %s560_s28, %s561_s29  }
  0x12   :  { %s562_s7 = smov [#allocation4]   ;;  %s533_s11 = scalar_lea.hbm %s660_s3, 2048 }
  0x13   :  { %s33_s8 = sshll.u32 %s562_s7, 4  ;;  %p534_p8 = scmp.ne.s32.totalorder %s660_s3, %s533_s11  ;;  %s34_s8 = int_to_ptr.vmem [resolvable:$true] %s33_s8 }
  0x14   :  { %p537_p9 = scmp.lt.u32.totalorder %s533_s11, %s660_s3 }
  0x16   :  { %p539_p10 = pnand %p537_p9, %p534_p8 }
  0x18   :  { %542 = shalt.err (!%p539_p10)
}
  0x19   :  { %s543_s16 = scalar_lea.vmem %s34_s8, 2048  ;;  %p548_p12 = scmp.lt.s32.totalorder %s34_s8, %s34_s8 }
  0x1a   :  { %p544_p11 = scmp.ne.s32.totalorder %s34_s8, %s543_s16  ;;  %p549_p13 = scmp.lt.s32.totalorder %s543_s16, %s543_s16 }
  0x1c   :  { %p550_p0 = por %p549_p13, %p548_p12 }
  0x1e   :  { %p551_p1 = pnand %p550_p0, %p544_p11 }
  0x20   :  { %554 = shalt.err (!%p551_p1)
}
  0x21   :  { %39 = dma.hbm_to_vmem [thread:$0]  %s660_s3, 2048, %s34_s8, [#allocation5], %s560_s28, %s560_s28, %s561_s29  }
  0x22   :  { %555 = dma.done.wait [#allocation3], 2048  }
  0x23   :  { %556 = vsyncadd [#allocation3], 4294965248 }
  0x24   :  { %557 = dma.done.wait [#allocation5], 2048  }
  0x25   :  { %558 = vsyncadd [#allocation5], 4294965248  ;;  %v563_v0 = vmov 0.0   ;;  %vm564_vm0 = vmmov 0   ;;  %v565_v1 = vmov 0.0|0.0   ;;  %vm55_vm1 = vcmask 64512  }
  0x26   :  { %377 = vmatprep.subr.mxu0 %v563_v0  ;;  %379 = vmatprep.mubr.msk.f32.mxu0 %vm564_vm0, %v563_v0  ;;  %v49_v2 = vld [vmem:[%s658_s1] sm:$0xff]  ;;  %v131_v5 = vld [vmem:[#allocation2 + $0x8] sm:$0xff]  ;;  %v132_v6 = vld [vmem:[#allocation2 + $0x10] sm:$0xff] }
  0x27   :  { %452 = vmatprep.subr.bf16.mxu1 %v565_v1  ;;  %414 = vmatprep.mubr.msk.f32.mxu1 %vm564_vm0, %v563_v0  ;;  %v48_v3 = vld [vmem:[%s657_s0] sm:$0xff]  ;;  %v133_v7 = vld [vmem:[#allocation2 + $0x18] sm:$0xff]  ;;  %v135_v11 = vld [vmem:[#allocation2 + $0x28] sm:$0xff] }
  0x28   :  { %v130_v4 = vld [vmem:[#allocation2] sm:$0xff]  ;;  %378 = vmatpush3.msra.mxu0 %v49_v2  ;;  %v456_v9 = vpack.c.bf16 %v133_v7, %v132_v6  ;;  %v136_v13 = vld [vmem:[#allocation2 + $0x30] sm:$0xff]  ;;  %v137_v14 = vld [vmem:[#allocation2 + $0x38] sm:$0xff] }
  0x29   :  { %380 = vmatmul.mubr.msk.f32.vlgmr.msra.gmra.mrb[0].mxu0 %vm55_vm1, %v48_v3  ;;  %v453_v8 = vpack.c.bf16 %v131_v5, %v130_v4  ;;  %476 = vmatprep.subr.bf16.mxu0 %v565_v1  ;;  %v134_v10 = vld [vmem:[#allocation2 + $0x20] sm:$0xff]  ;;  %v462_v15 = vpack.c.bf16 %v137_v14, %v136_v13  ;;  %v139_v17 = vld [vmem:[#allocation2 + $0x48] sm:$0xff]  ;;  %v140_v19 = vld [vmem:[#allocation2 + $0x50] sm:$0xff] }
  0x2a   :  { %449 = vmatprep.mubr.msk.f32.mxu0 %vm564_vm0, %v563_v0  ;;  %v459_v12 = vpack.c.bf16 %v135_v11, %v134_v10  ;;  %v138_v16 = vld [vmem:[#allocation2 + $0x40] sm:$0xff]  ;;  %v141_v20 = vld [vmem:[#allocation2 + $0x58] sm:$0xff]  ;;  %v143_v23 = vld [vmem:[#allocation2 + $0x68] sm:$0xff] }
  0x2b   :  { %454 = vmatpush3.bf16.msra.mxu1 %v453_v8  ;;  %v465_v18 = vpack.c.bf16 %v139_v17, %v138_v16  ;;  %v468_v21 = vpack.c.bf16 %v141_v20, %v140_v19  ;;  %v142_v22 = vld [vmem:[#allocation2 + $0x60] sm:$0xff]  ;;  %v144_v25 = vld [vmem:[#allocation2 + $0x70] sm:$0xff]  ;;  %v145_v26 = vld [vmem:[#allocation2 + $0x78] sm:$0xff] }
  0x2c   :  { %455 = vmatprep.subr.bf16.mxu1 %v565_v1  ;;  %v471_v24 = vpack.c.bf16 %v143_v23, %v142_v22  ;;  %v474_v27 = vpack.c.bf16 %v145_v26, %v144_v25  ;;  %v222_v28 = vld [vmem:[#allocation4] sm:$0xff]  ;;  %v223_v29 = vld [vmem:[#allocation4 + $0x8] sm:$0xff]  ;;  %v224_v30 = vld [vmem:[#allocation4 + $0x10] sm:$0xff] }
  0x2d   :  { %v477_v31 = vpack.c.bf16 %v223_v29, %v222_v28  ;;  %v225_v32 = vld [vmem:[#allocation4 + $0x18] sm:$0xff]  ;;  %v226_v34 = vld [vmem:[#allocation4 + $0x20] sm:$0xff]  ;;  %v227_v35 = vld [vmem:[#allocation4 + $0x28] sm:$0xff] }
  0x2e   :  { %v480_v33 = vpack.c.bf16 %v225_v32, %v224_v30  ;;  %v483_v36 = vpack.c.bf16 %v227_v35, %v226_v34  ;;  %v228_v37 = vld [vmem:[#allocation4 + $0x30] sm:$0xff]  ;;  %v229_v38 = vld [vmem:[#allocation4 + $0x38] sm:$0xff]  ;;  %v230_v40 = vld [vmem:[#allocation4 + $0x40] sm:$0xff] }
  0x2f   :  { %457 = vmatpush3.bf16.msra.mxu1 %v456_v9  ;;  %478 = vmatpush3.bf16.msra.mxu0 %v477_v31  ;;  %v486_v39 = vpack.c.bf16 %v229_v38, %v228_v37  ;;  %v231_v41 = vld [vmem:[#allocation4 + $0x48] sm:$0xff]  ;;  %v232_v43 = vld [vmem:[#allocation4 + $0x50] sm:$0xff]  ;;  %v233_v44 = vld [vmem:[#allocation4 + $0x58] sm:$0xff] }
  0x30   :  { %458 = vmatprep.subr.bf16.mxu1 %v565_v1  ;;  %479 = vmatprep.subr.bf16.mxu0 %v565_v1  ;;  %v489_v42 = vpack.c.bf16 %v231_v41, %v230_v40  ;;  %v492_v45 = vpack.c.bf16 %v233_v44, %v232_v43  ;;  %v234_v46 = vld [vmem:[#allocation4 + $0x60] sm:$0xff]  ;;  %v235_v47 = vld [vmem:[#allocation4 + $0x68] sm:$0xff]  ;;  %v236_v54 = vld [vmem:[#allocation4 + $0x70] sm:$0xff] }
  0x31   :  { %v495_v48 = vpack.c.bf16 %v235_v47, %v234_v46  ;;  %v337_v49 = vld [vmem:[%s661_s4] ss:$0 sm:$0xff]  ;;  %v237_v55 = vld [vmem:[#allocation4 + $0x78] sm:$0xff]  ;;  %v339_v57 = vld [vmem:[%s661_s4 + $0x1] ss:$0 sm:$0xff] }
  0x32   :  { %v498_v56 = vpack.c.bf16 %v237_v55, %v236_v54  ;;  %v340_v62 = vld [vmem:[%s661_s4 + $0x2] ss:$0 sm:$0xff] }
  0x33   :  { %460 = vmatpush3.bf16.msra.mxu1 %v459_v12  ;;  %481 = vmatpush3.bf16.msra.mxu0 %v480_v33 }
  0x34   :  { %461 = vmatprep.subr.bf16.mxu1 %v565_v1  ;;  %482 = vmatprep.subr.bf16.mxu0 %v565_v1 }
  0x37   :  { %463 = vmatpush3.bf16.msra.mxu1 %v462_v15  ;;  %484 = vmatpush3.bf16.msra.mxu0 %v483_v36 }
  0x38   :  { %464 = vmatprep.subr.bf16.mxu1 %v565_v1  ;;  %485 = vmatprep.subr.bf16.mxu0 %v565_v1 }
  0x3b   :  { %466 = vmatpush3.bf16.msra.mxu1 %v465_v18  ;;  %487 = vmatpush3.bf16.msra.mxu0 %v486_v39 }
  0x3c   :  { %467 = vmatprep.subr.bf16.mxu1 %v565_v1  ;;  %488 = vmatprep.subr.bf16.mxu0 %v565_v1 }
  0x3f   :  { %469 = vmatpush3.bf16.msra.mxu1 %v468_v21  ;;  %490 = vmatpush3.bf16.msra.mxu0 %v489_v42 }
  0x40   :  { %470 = vmatprep.subr.bf16.mxu1 %v565_v1  ;;  %491 = vmatprep.subr.bf16.mxu0 %v565_v1 }
  0x43   :  { %472 = vmatpush3.bf16.msra.mxu1 %v471_v24  ;;  %493 = vmatpush3.bf16.msra.mxu0 %v492_v45 }
  0x44   :  { %473 = vmatprep.subr.bf16.mxu1 %v565_v1  ;;  %494 = vmatprep.subr.bf16.mxu0 %v565_v1 }
  0x47   :  { %475 = vmatpush3.bf16.msra.mxu1 %v474_v27  ;;  %496 = vmatpush3.bf16.msra.mxu0 %v495_v48 }
  0x48   :  { %497 = vmatprep.subr.bf16.mxu0 %v565_v1 }
  0x4b   :  { %499 = vmatpush3.bf16.msra.mxu0 %v498_v56 }
  0xfc   :  { %v125_v50 = vpop.f32.mrb[0].mxu0 }
  0xfd   :  { %v126_v51 = vadd.f32 %v337_v49, %v125_v50  ;;  %v381_v52 = vpop.f32.mrb[1].mxu0 }
  0xff   :  { %v129_v53 = vmax.f32 %v126_v51, 0.0 }
 0x101   :  { %415 = vmatmul.mubr.f32.vlgmr.msra.gmra.mrb[0].mxu1 %v129_v53 }
 0x1d4   :  { %v217_v58 = vpop.f32.mrb[0].mxu1 }
 0x1d5   :  { %v218_v59 = vadd.f32 %v339_v57, %v217_v58  ;;  %v416_v60 = vpop.f32.mrb[1].mxu1 }
 0x1d7   :  { %v221_v61 = vmax.f32 %v218_v59, 0.0 }
 0x1d9   :  { %450 = vmatmul.mubr.f32.vlgmr.msra.gmra.mrb[2].mxu0 %v221_v61 }
 0x2ac   :  { %v309_v63 = vpop.f32.mrb[2].mxu0 }
 0x2ad   :  { %v310_v0 = vadd.f32 %v340_v62, %v309_v63  ;;  %v451_v1 = vpop.f32.mrb[3].mxu0 }
 0x2af   :  { %v313_v2 = vrot.slane %v310_v0, 4 }
 0x2b1   :  { %v314_v3 = vmax.f32 %v310_v0, %v313_v2 }
 0x2b3   :  { %v315_v4 = vrot.slane %v314_v3, 2 }
 0x2b5   :  { %v316_v5 = vmax.f32 %v314_v3, %v315_v4 }
 0x2b7   :  { %v317_v6 = vrot.slane %v316_v5, 1 }
 0x2b9   :  { %v318_v7 = vmax.f32 %v316_v5, %v317_v6 }
 0x2bb   :  { %v319_v8 = vsub.f32 %v310_v0, %v318_v7 }
 0x2bd   :  { %v320_v9 = vmul.f32 1.442695, %v319_v8 }
 0x2bf   :  { %507 = vpow2.f32 %v320_v9 }
 0x2c9   :  { %v508_v10 = vpop.eup %507 }
 0x2ca   :  { %v322_v11 = vrot.slane %v508_v10, 4 }
 0x2cc   :  { %v323_v12 = vadd.f32 %v508_v10, %v322_v11 }
 0x2ce   :  { %v324_v13 = vrot.slane %v323_v12, 2 }
 0x2d0   :  { %v325_v14 = vadd.f32 %v324_v13, %v323_v12 }
 0x2d2   :  { %v326_v15 = vrot.slane %v325_v14, 1 }
 0x2d4   :  { %v327_v16 = vadd.f32 %v326_v15, %v325_v14 }
 0x2d6   :  { %509 = vrcp.f32 %v327_v16 }
 0x2e0   :  { %v510_v17 = vpop.eup %509 }
 0x2e1   :  { %v329_v18 = vmul.f32 %v510_v17, %v508_v10 }
 0x2e3   :  { %330 = vst [vmem:[%s662_s5] sm:$0xff] %v329_v18 }
 0x2e4   :  { %335 = vsyncpa [#allocation3], 1 }
 0x2e5   :  { %336 = vsyncpa [#allocation5], 1 }

</bundles_post_ra>
